<compile_context>
chip_gen: v6e
topology: v6e:2x2x1
jax: 0.10.0
libtpu: 0.0.40
codegen_flags: <defaults>
</compile_context>

<pallas_src>
import functools

import jax
import jax.numpy as jnp
from jax.experimental import pallas as pl
from jax.experimental.pallas import tpu as pltpu


def _round_up(x: int, m: int) -> int:
    return (x + m - 1) // m * m


def _linear_kernel(x_ref, w_ref, b_ref, o_ref):
    # x: [TM, F]  w: [F, Cp]  b: [1, Cp] (f32)  o: [TM, Cp]
    acc = jnp.dot(x_ref[...], w_ref[...], preferred_element_type=jnp.float32)
    o_ref[...] = (acc + b_ref[...]).astype(o_ref.dtype)


def prepare_params(weight, bias):
    """One-time parameter prep (hoisted out of the per-call path).

    weight: [num_classes, feat_dim] (PyTorch nn.Linear layout)
    bias:   [num_classes]
    returns (w_p [feat_dim, Cp], b_p [1, Cp] f32) with Cp = round_up(C, 128).
    Zero-padding of the extra output columns is exact for a linear layer.
    """
    C, F = weight.shape
    Cp = _round_up(C, 128)
    w_p = jnp.zeros((F, Cp), weight.dtype).at[:, :C].set(weight.T)
    b_p = jnp.zeros((1, Cp), jnp.float32).at[0, :C].set(bias.astype(jnp.float32))
    return w_p, b_p


@functools.partial(jax.jit, static_argnames=("num_classes",))
def sp_linear_classifier(features, w_p, b_p, *, num_classes):
    """Forward of sp_LinearClassifier: features @ weight.T + bias.

    features: [B, feat_dim]
    w_p, b_p: outputs of prepare_params
    returns:  [B, num_classes]
    """
    B, F = features.shape
    Fw, Cp = w_p.shape
    assert F == Fw, "feature dim mismatch"

    # Batch tile: multiple of 8, capped at 1024; pad B up so the grid divides.
    TM = min(1024, _round_up(B, 8))
    Bp = _round_up(B, TM)
    if Bp != B:
        x_p = jnp.zeros((Bp, F), features.dtype).at[:B, :].set(features)
    else:
        x_p = features

    itemsize = features.dtype.itemsize
    bytes_accessed = (
        Bp * F * itemsize            # x
        + F * Cp * w_p.dtype.itemsize  # w (resident, read once)
        + Cp * 4                       # bias (f32)
        + Bp * Cp * itemsize           # out
    )

    out_p = pl.pallas_call(
        _linear_kernel,
        out_shape=jax.ShapeDtypeStruct((Bp, Cp), features.dtype),
        grid=(Bp // TM,),
        in_specs=[
            pl.BlockSpec((TM, F), lambda i: (i, 0)),     # x: tiled over batch
            pl.BlockSpec((F, Cp), lambda i: (0, 0)),     # w: VMEM-resident
            pl.BlockSpec((1, Cp), lambda i: (0, 0)),     # b: VMEM-resident
        ],
        out_specs=pl.BlockSpec((TM, Cp), lambda i: (i, 0)),
        compiler_params=pltpu.CompilerParams(
            dimension_semantics=("parallel",)),
        cost_estimate=pl.CostEstimate(
            flops=2 * Bp * F * Cp,
            transcendentals=0,
            bytes_accessed=bytes_accessed),
    )(x_p, w_p, b_p)

    return out_p[:B, :num_classes]


if __name__ == "__main__":
    num_classes = 5
    feat_dim = 64
    batch = 8

    key = jax.random.PRNGKey(0)
    k_x, k_w, k_b = jax.random.split(key, 3)

    # Deterministic parameter init (mimics nn.Linear's uniform(-1/sqrt(fan_in), ...)).
    bound = 1.0 / jnp.sqrt(jnp.float32(feat_dim))
    weight = jax.random.uniform(k_w, (num_classes, feat_dim), jnp.float32, -bound, bound)
    bias = jax.random.uniform(k_b, (num_classes,), jnp.float32, -bound, bound)
    features = jax.random.normal(k_x, (batch, feat_dim), jnp.float32)

    # Parameter prep happens once (outside the per-call path).
    w_p, b_p = prepare_params(weight, bias)

    out = sp_linear_classifier(features, w_p, b_p, num_classes=num_classes)
    out = jax.block_until_ready(out)

    # Reference check against plain JAX (same math as torch F.linear).
    ref = features @ weight.T + bias
    assert out.shape == (batch, num_classes)
    assert jnp.allclose(out, ref, atol=1e-5, rtol=1e-5)

    print("KERNEL_OK")
</pallas_src>

<mosaic_0001>
module attributes {stable_mosaic.version = 11 : i64} {
  func.func @_linear_kernel(%arg0: i32, %arg1: memref<8x64xf32, #tpu.memory_space<vmem>>, %arg2: memref<64x128xf32, #tpu.memory_space<vmem>>, %arg3: memref<1x128xf32, #tpu.memory_space<vmem>>, %arg4: memref<8x128xf32, #tpu.memory_space<vmem>>) attributes {dimension_semantics = [#tpu.dimension_semantics<parallel>], iteration_bounds = array<i64: 1>, scalar_prefetch = 0 : i64, scratch_operands = 0 : i64, tpu.core_type = #tpu.core_type<tc>, window_params = [{transform_indices = @transform_0, window_bounds = array<i64: 8, 64>}, {pipeline_mode = #tpu.pipeline_mode<synchronous>, transform_indices = @transform_1, window_bounds = array<i64: 64, 128>}, {pipeline_mode = #tpu.pipeline_mode<synchronous>, transform_indices = @transform_2, window_bounds = array<i64: 1, 128>}, {transform_indices = @transform_3, window_bounds = array<i64: 8, 128>}]} {
    %c0 = arith.constant 0 : index
    %c0_0 = arith.constant 0 : index
    %0 = vector.load %arg1[%c0, %c0_0] : memref<8x64xf32, #tpu.memory_space<vmem>>, vector<8x64xf32>
    %c0_1 = arith.constant 0 : index
    %c0_2 = arith.constant 0 : index
    %1 = vector.load %arg2[%c0_1, %c0_2] : memref<64x128xf32, #tpu.memory_space<vmem>>, vector<64x128xf32>
    %cst = arith.constant dense<0.000000e+00> : vector<8x128xf32>
    %2 = tpu.matmul %0, %1, %cst {dimension_numbers = #tpu.dot_dimension_numbers<[1], [0], [0], [1], [0, 0, 1, 1], [], []>} : vector<8x64xf32>, vector<64x128xf32>, vector<8x128xf32> -> vector<8x128xf32>
    %c0_3 = arith.constant 0 : index
    %c0_4 = arith.constant 0 : index
    %3 = vector.load %arg3[%c0_3, %c0_4] : memref<1x128xf32, #tpu.memory_space<vmem>>, vector<1x128xf32>
    %4 = vector.broadcast %3 : vector<1x128xf32> to vector<8x128xf32>
    %5 = arith.addf %2, %4 : vector<8x128xf32>
    %c0_5 = arith.constant 0 : index
    %c0_6 = arith.constant 0 : index
    %6 = vector.load %arg4[%c0_5, %c0_6] : memref<8x128xf32, #tpu.memory_space<vmem>>, vector<8x128xf32>
    tpu.vector_store %arg4[%c0_5, %c0_6], %5 {strides = array<i32>} : memref<8x128xf32, #tpu.memory_space<vmem>>, vector<8x128xf32>,
    return
  }
  func.func @transform_0(%arg0: i32) -> (i32, i32) {
    %c0_i32 = arith.constant 0 : i32
    %c0_i32_0 = arith.constant 0 : i32
    return %arg0, %c0_i32 : i32, i32
  }
  func.func @transform_1(%arg0: i32) -> (i32, i32) {
    %c0_i32 = arith.constant 0 : i32
    %c0_i32_0 = arith.constant 0 : i32
    %c0_i32_1 = arith.constant 0 : i32
    return %c0_i32, %c0_i32_0 : i32, i32
  }
  func.func @transform_2(%arg0: i32) -> (i32, i32) {
    %c0_i32 = arith.constant 0 : i32
    %c0_i32_0 = arith.constant 0 : i32
    %c0_i32_1 = arith.constant 0 : i32
    return %c0_i32, %c0_i32_0 : i32, i32
  }
  func.func @transform_3(%arg0: i32) -> (i32, i32) {
    %c0_i32 = arith.constant 0 : i32
    %c0_i32_0 = arith.constant 0 : i32
    return %arg0, %c0_i32 : i32, i32
  }
}

</mosaic_0001>

<bundles_post_ra>
// kernel: sp_linear_classifier.1
= control target key start
LH: loop header
LB: loop body
LE: loop exit
PB: predicated region body
PF: predicated region fallthrough
CT: control target
= control target key end

     0   :  { %8 = vsyncpa [#allocation3], 0  ;;  %s290_s0 = inlined_call_operand.hbm [shape: f32[8,64], index: 0, kind: input, shape index: {}]   ;;  %s291_s1 = inlined_call_operand.hbm [shape: f32[64,128], index: 1, kind: input, shape index: {}]   ;;  %s292_s2 = inlined_call_operand.vmem [shape: f32[1,128], index: 2, kind: input, shape index: {}]   ;;  %s293_s3 = inlined_call_operand.hbm [shape: f32[8,128], index: 3, kind: output, shape index: {}]  }
   0x1   :  { %9 = vsyncpa [#allocation6], 0 }
   0x2   :  { %10 = vsyncpa [#allocation4], 0  ;;  %s251_s12 = smov [#allocation2]   ;;  %s252_s14 = smov [#allocation5]  }
   0x3   :  { %s17_s13 = sshll.u32 %s251_s12, 4  ;;  %s26_s15 = sshll.u32 %s252_s14, 4  ;;  %s18_s13 = int_to_ptr.vmem [resolvable:$true] %s17_s13  ;;  %s27_s15 = int_to_ptr.vmem [resolvable:$true] %s26_s15 }
   0x4   :  { %s193_s16 = scalar_lea.vmem %s18_s13, 128  ;;  %p198_p1 = scmp.lt.s32.totalorder %s18_s13, %s18_s13 }
   0x5   :  { %p194_p0 = scmp.ne.s32.totalorder %s18_s13, %s193_s16  ;;  %p199_p2 = scmp.lt.s32.totalorder %s193_s16, %s193_s16 }
   0x7   :  { %p200_p3 = por %p199_p2, %p198_p1 }
   0x9   :  { %p201_p4 = pnand %p200_p3, %p194_p0 }
   0xb   :  { %204 = shalt.err (!%p201_p4)
}
   0xc   :  { %20 = dma.hbm_to_vmem [thread:$0]  %s290_s0, 128, %s18_s13, [#allocation3]  }
   0xd   :  { %s213_s19 = scalar_lea.vmem %s27_s15, 1024  ;;  %p218_p6 = scmp.lt.s32.totalorder %s27_s15, %s27_s15 }
   0xe   :  { %p214_p5 = scmp.ne.s32.totalorder %s27_s15, %s213_s19  ;;  %p219_p7 = scmp.lt.s32.totalorder %s213_s19, %s213_s19 }
  0x10   :  { %p220_p8 = por %p219_p7, %p218_p6 }
  0x12   :  { %p221_p9 = pnand %p220_p8, %p214_p5 }
  0x14   :  { %224 = shalt.err (!%p221_p9)
}
  0x15   :  { %s253_s20 = smov 128   ;;  %s254_s21 = smov 8  }
  0x16   :  { %32 = dma.hbm_to_vmem [thread:$0]  %s291_s1, 1024, %s27_s15, [#allocation6], %s253_s20, %s253_s20, %s254_s21  }
  0x17   :  { %245 = dma.done.wait [#allocation3], 128  }
  0x18   :  { %246 = vsyncadd [#allocation3], 4294967168 }
  0x19   :  { %247 = dma.done.wait [#allocation6], 1024  }
  0x1a   :  { %248 = vsyncadd [#allocation6], 4294966272  ;;  %v255_v0 = vmov 0.0   ;;  %vm256_vm0 = vmmov 0   ;;  %v49_v1 = vld [vmem:[#allocation5 + $0x38] sm:$0xff]  ;;  %v48_v2 = vld [vmem:[#allocation5 + $0x30] sm:$0xff] }
  0x1b   :  { %159 = vmatprep.subr.mxu0 %v255_v0  ;;  %175 = vmatprep.mubr.msk.f32.mxu0 %vm256_vm0, %v255_v0  ;;  %v47_v3 = vld [vmem:[#allocation5 + $0x28] sm:$0xff]  ;;  %v46_v4 = vld [vmem:[#allocation5 + $0x20] sm:$0xff]  ;;  %v45_v5 = vld [vmem:[#allocation5 + $0x18] sm:$0xff]  ;;  %vm57_vm1 = vcmask 523264   ;;  %s257_s24 = smov [#allocation7]  }
  0x1c   :  { %160 = vmatpush3.msra.mxu0 %v49_v1  ;;  %v44_v6 = vld [vmem:[#allocation5 + $0x10] sm:$0xff]  ;;  %v43_v7 = vld [vmem:[#allocation5 + $0x8] sm:$0xff]  ;;  %v42_v8 = vld [vmem:[#allocation5] sm:$0xff]  ;;  %s138_s25 = sshll.u32 %s257_s24, 4  ;;  %s139_s25 = int_to_ptr.vmem [resolvable:$true] %s138_s25 }
  0x1d   :  { %161 = vmatprep.subr.mxu0 %v255_v0  ;;  %v41_v9 = vld [vmem:[#allocation2] sm:$0xff]  ;;  %s225_s26 = scalar_lea.vmem %s139_s25, 128  ;;  %p230_p11 = scmp.lt.s32.totalorder %s139_s25, %s139_s25 }
  0x1e   :  { %162 = vmatpush3.msra.mxu0 %v48_v2  ;;  %v148_v10 = vld [vmem:[%s292_s2] ss:$0 sm:$0xff]  ;;  %p226_p10 = scmp.ne.s32.totalorder %s139_s25, %s225_s26  ;;  %p231_p12 = scmp.lt.s32.totalorder %s225_s26, %s225_s26 }
  0x1f   :  { %163 = vmatprep.subr.mxu0 %v255_v0 }
  0x20   :  { %164 = vmatpush3.msra.mxu0 %v47_v3  ;;  %p232_p13 = por %p231_p12, %p230_p11 }
  0x21   :  { %165 = vmatprep.subr.mxu0 %v255_v0 }
  0x22   :  { %166 = vmatpush3.msra.mxu0 %v46_v4  ;;  %p233_p0 = pnand %p232_p13, %p226_p10 }
  0x23   :  { %167 = vmatprep.subr.mxu0 %v255_v0 }
  0x24   :  { %168 = vmatpush3.msra.mxu0 %v45_v5 }
  0x25   :  { %169 = vmatprep.subr.mxu0 %v255_v0 }
  0x26   :  { %170 = vmatpush3.msra.mxu0 %v44_v6 }
  0x27   :  { %171 = vmatprep.subr.mxu0 %v255_v0 }
  0x28   :  { %172 = vmatpush3.msra.mxu0 %v43_v7 }
  0x29   :  { %173 = vmatprep.subr.mxu0 %v255_v0 }
  0x2a   :  { %174 = vmatpush3.msra.mxu0 %v42_v8 }
  0x2b   :  { %176 = vmatmul.mubr.msk.f32.vlgmr.msra.gmra.mxu0 %vm57_vm1, %v41_v9 }
  0xeb   :  { %v127_v11 = vpop.f32.mrf.mxu0 }
  0xec   :  { %v128_v12 = vadd.f32 %v148_v10, %v127_v11 }
  0xed   :  { %v177_v13 = vpop.f32.mrf.mxu0 }
  0xee   :  { %131 = vst [vmem:[#allocation7] sm:$0xff] %v128_v12 }
  0xef   :  { %236 = shalt.err (!%p233_p0)
}
  0xf0   :  { %141 = dma.vmem_to_hbm [thread:$0]  %s139_s25, 128, %s293_s3, [#allocation4]  }
  0xf1   :  { %249 = dma.done.wait [#allocation4], 128  }
  0xf2   :  { %250 = vsyncadd [#allocation4], 4294967168 }
  0xf3   :  { %145 = vsyncpa [#allocation3], 1 }
  0xf4   :  { %146 = vsyncpa [#allocation6], 1 }
  0xf5   :  { %147 = vsyncpa [#allocation4], 1 }

</bundles_post_ra>
